<compile_context>
chip_gen: v5e
topology: v5e:2x2
jax: 0.10.0
libtpu: 0.0.40
codegen_flags: <defaults>
</compile_context>

<pallas_src>
import functools

import jax
import jax.numpy as jnp
from jax.experimental import pallas as pl
from jax.experimental.pallas import tpu as pltpu

NEG_SLOPE = 0.01   # nn.LeakyReLU default negative_slope
L1_EPS = 1e-12     # F.normalize default eps
BN_EPS = 1e-5      # nn.BatchNorm2d default eps


# --------------------------------------------------------------------------- #
# Kernel
# --------------------------------------------------------------------------- #
def _yuyi_point_update_kernel(de_ref, ie_ref, pn_ref,
                              w1a_ref, w1b_ref, w2_ref, b1_ref, b2_ref,
                              out_ref, *, bt, tn, n_total, compute_dtype,
                              approx_rcp):
    # ---- diagonal mask, generated in-kernel (rides idle VPU slots) ---------
    row0 = pl.program_id(1) * tn
    rows = jax.lax.broadcasted_iota(jnp.int32, (tn, n_total), 0) + row0
    cols = jax.lax.broadcasted_iota(jnp.int32, (tn, n_total), 1)
    offdiag = (rows != cols)[None]                       # (1, tn, N) bool

    de = de_ref[...]                                     # (bt, tn, N) compute dtype
    ie = ie_ref[...]
    zero = jnp.zeros((), de.dtype)
    de = jnp.where(offdiag, de, zero)
    ie = jnp.where(offdiag, ie, zero)

    # ---- L1 row norms, applied as a post-matmul per-row scale --------------
    #   (diag(1/rowsum) @ x) @ pn == diag(1/rowsum) @ (x @ pn)
    denom_f = jnp.maximum(
        jnp.sum(jnp.abs(de).astype(jnp.float32), axis=-1, keepdims=True), L1_EPS)
    denom_i = jnp.maximum(
        jnp.sum(jnp.abs(ie).astype(jnp.float32), axis=-1, keepdims=True), L1_EPS)
    if approx_rcp:
        inv_f = pl.reciprocal(denom_f, approx=True)      # EUP slot, ~free
        inv_i = pl.reciprocal(denom_i, approx=True)
    else:                                                # exact f32 validation path
        inv_f = 1.0 / denom_f
        inv_i = 1.0 / denom_i

    # ---- edge aggregation: de & ie stacked on the row (M) axis -------------
    pn = pn_ref[...].astype(compute_dtype)               # (bt, N, D)
    edges = jnp.concatenate([de, ie], axis=1)            # (bt, 2*tn, N), sublane concat
    agg = jnp.einsum('brk,bkd->brd', edges, pn,
                     preferred_element_type=jnp.float32)  # (bt, 2*tn, D) f32
    aggr_f = agg[:, :tn, :] * inv_f                      # (bt, tn, D) f32
    aggr_i = agg[:, tn:, :] * inv_i

    # ---- per-node MLP on (bt*tn, .) flattened operands ---------------------
    m = bt * tn
    aggr_f = aggr_f.reshape(m, -1).astype(compute_dtype)
    aggr_i = aggr_i.reshape(m, -1).astype(compute_dtype)

    # cat([aggr_f, aggr_i], -1) @ W1  ==  aggr_f @ W1[:D] + aggr_i @ W1[D:]
    # (BatchNorm scale already folded into the conv weights; bias added here.)
    h = (jnp.dot(aggr_f, w1a_ref[...], preferred_element_type=jnp.float32)
         + jnp.dot(aggr_i, w1b_ref[...], preferred_element_type=jnp.float32)
         + b1_ref[...])                                  # (m, c1) + (1, c1)
    h = jnp.maximum(h, NEG_SLOPE * h)                    # LeakyReLU

    o = jnp.dot(h.astype(compute_dtype), w2_ref[...],
                preferred_element_type=jnp.float32) + b2_ref[...]
    o = jnp.maximum(o, NEG_SLOPE * o)                    # LeakyReLU

    out_ref[...] = o.reshape(bt, tn, -1).astype(out_ref.dtype)


# --------------------------------------------------------------------------- #
# Tiling heuristics
# --------------------------------------------------------------------------- #
def _num_tensorcores_per_chip():
    try:
        kind = jax.devices()[0].device_kind.lower()
    except Exception:
        return 1
    # v7x has two TensorCores per chip; v5e/v6e have one.
    return 2 if "7" in kind else 1


def _pick_row_tile(N):
    # Row-tile the edges only when N is large and the block's lane dim (N)
    # stays a multiple of 128 once tn < N.
    if N <= 512 or N % 128 != 0:
        return N
    for tn in (512, 256, 128):
        if N % tn == 0:
            return tn
    return N


def _pick_batch_tile(B, fits, num_cores):
    divisors = [t for t in range(1, B + 1) if B % t == 0]
    fitting = [t for t in divisors if fits(t)] or [1]
    if num_cores <= 1:
        # Single TensorCore: biggest block that fits wins; grid extent 1 is fine.
        return max(fitting)
    # Two TensorCores: prefer an even batch-grid extent (>= 2) so megacore
    # sharding under dimension_semantics=("parallel", ...) is balanced.
    even = [t for t in fitting if (B // t) >= 2 and (B // t) % 2 == 0]
    if even:
        return max(even)
    multi = [t for t in fitting if (B // t) >= 2]
    return max(multi) if multi else max(fitting)


# --------------------------------------------------------------------------- #
# Wrapper
# --------------------------------------------------------------------------- #
def yuyi_point_update(distribution_edge, instance_edge, point_node, params,
                      *, compute_dtype=jnp.bfloat16):
    B, N, D = point_node.shape
    w1t = params["w1t"]                    # (2*D, c1) = conv1.weight[:, :, 0, 0].T
    w2t = params["w2t"]                    # (c1, base_c)
    c1 = w1t.shape[1]
    base_c = w2t.shape[1]
    assert w1t.shape[0] == 2 * D and w2t.shape[0] == c1

    compute_dtype = jnp.dtype(compute_dtype)
    approx_rcp = compute_dtype != jnp.dtype(jnp.float32)
    out_dtype = point_node.dtype

    # BatchNorm2d (eval) folded into the bias-free 1x1 convs:
    #   y = (x @ W) * s + b  ==  x @ (W * s) + b
    scale1 = params["bn1_gamma"] * jax.lax.rsqrt(params["bn1_var"] + BN_EPS)
    bias1 = params["bn1_beta"] - params["bn1_mean"] * scale1
    scale2 = params["bn2_gamma"] * jax.lax.rsqrt(params["bn2_var"] + BN_EPS)
    bias2 = params["bn2_beta"] - params["bn2_mean"] * scale2

    w1_fold = (w1t * scale1[None, :]).astype(compute_dtype)
    w1a = w1_fold[:D]                      # (D, c1): aggr_feat input channels
    w1b = w1_fold[D:]                      # (D, c1): aggr_instance input channels
    w2p = (w2t * scale2[None, :]).astype(compute_dtype)
    b1 = bias1.reshape(1, c1).astype(jnp.float32)
    b2 = bias2.reshape(1, base_c).astype(jnp.float32)

    # Edges / point features in the compute dtype (bf16 halves HBM traffic);
    # all in-kernel accumulation stays f32.
    de = distribution_edge.astype(compute_dtype)
    ie = instance_edge.astype(compute_dtype)
    pn = point_node.astype(compute_dtype)

    tn = _pick_row_tile(N)

    # ---- VMEM footprint model -> bt + explicit vmem limit -------------------
    cbytes = compute_dtype.itemsize
    obytes = jnp.dtype(out_dtype).itemsize
    per_batch_io = (2 * tn * N + N * D) * cbytes + tn * base_c * obytes
    per_batch_tmp = 2 * tn * N * cbytes + 2 * tn * (D + c1 + base_c) * 4
    resident = (2 * D * c1 + c1 * base_c) * cbytes + (c1 + base_c) * 4
    budget = 28 * 1024 * 1024              # safe under every generation's scoped VMEM

    def fits(t):
        return resident + 2 * t * per_batch_io + t * per_batch_tmp <= budget

    bt = _pick_batch_tile(B, fits, _num_tensorcores_per_chip())
    footprint = resident + 2 * bt * per_batch_io + bt * per_batch_tmp
    vmem_limit = int(min(60 * 2**20, max(16 * 2**20, footprint + 4 * 2**20)))

    grid = (B // bt, N // tn)

    # Advisory cost estimate: edge aggregation + 2-layer MLP, f32 accumulation.
    flops = B * (2 * 2 * N * N * D + 2 * 2 * N * D * c1 + 2 * N * c1 * base_c)
    bytes_accessed = int(2 * B * N * N * cbytes + B * N * D * cbytes
                         + B * N * base_c * obytes
                         + (2 * D * c1 + c1 * base_c) * cbytes
                         + (c1 + base_c) * 4)
    cost = pl.CostEstimate(flops=flops, transcendentals=2 * B * N,
                           bytes_accessed=bytes_accessed)

    kernel = functools.partial(
        _yuyi_point_update_kernel, bt=bt, tn=tn, n_total=N,
        compute_dtype=compute_dtype, approx_rcp=approx_rcp)

    out = pl.pallas_call(
        kernel,
        out_shape=jax.ShapeDtypeStruct((B, N, base_c), out_dtype),
        grid_spec=pltpu.PrefetchScalarGridSpec(
            num_scalar_prefetch=0,
            grid=grid,
            in_specs=[
                pl.BlockSpec((bt, tn, N), lambda i, j: (i, j, 0)),   # dist edge
                pl.BlockSpec((bt, tn, N), lambda i, j: (i, j, 0)),   # inst edge
                pl.BlockSpec((bt, N, D), lambda i, j: (i, 0, 0)),    # point node
                pl.BlockSpec((D, c1), lambda i, j: (0, 0)),          # W1 top half
                pl.BlockSpec((D, c1), lambda i, j: (0, 0)),          # W1 bottom half
                pl.BlockSpec((c1, base_c), lambda i, j: (0, 0)),     # W2
                pl.BlockSpec((1, c1), lambda i, j: (0, 0)),          # folded BN bias 1
                pl.BlockSpec((1, base_c), lambda i, j: (0, 0)),      # folded BN bias 2
            ],
            out_specs=pl.BlockSpec((bt, tn, base_c), lambda i, j: (i, j, 0)),
        ),
        compiler_params=pltpu.CompilerParams(
            dimension_semantics=("parallel", "parallel"),
            vmem_limit_bytes=vmem_limit),
        cost_estimate=cost,
    )(de, ie, pn, w1a, w1b, w2p, b1, b2)

    return out


# --------------------------------------------------------------------------- #
# Pure-JAX reference (mirrors the PyTorch forward, eval mode)
# --------------------------------------------------------------------------- #
def yuyi_point_update_ref(distribution_edge, instance_edge, point_node, params):
    B, N, D = point_node.shape
    mask = 1.0 - jnp.eye(N, dtype=point_node.dtype)

    def l1norm(x):
        return x / jnp.maximum(
            jnp.sum(jnp.abs(x), axis=-1, keepdims=True), L1_EPS)

    ef = l1norm(distribution_edge * mask)
    ei = l1norm(instance_edge * mask)
    aggr_f = jnp.einsum('bij,bjd->bid', ef, point_node)
    aggr_i = jnp.einsum('bij,bjd->bid', ei, point_node)
    x = jnp.concatenate([aggr_f, aggr_i], axis=-1)           # (B, N, 2D)

    scale1 = params["bn1_gamma"] / jnp.sqrt(params["bn1_var"] + BN_EPS)
    bias1 = params["bn1_beta"] - params["bn1_mean"] * scale1
    scale2 = params["bn2_gamma"] / jnp.sqrt(params["bn2_var"] + BN_EPS)
    bias2 = params["bn2_beta"] - params["bn2_mean"] * scale2

    h = (x @ params["w1t"]) * scale1 + bias1
    h = jnp.where(h >= 0, h, NEG_SLOPE * h)
    o = (h @ params["w2t"]) * scale2 + bias2
    o = jnp.where(o >= 0, o, NEG_SLOPE * o)
    return o


def init_params(key, in_c, base_c):
    """Synthetic parameters matching YuyiPointUpdate.__init__ shapes.

    Conv2d 1x1 weights (out, in, 1, 1) are stored transposed as (in, out);
    BatchNorm2d affine params / running stats are deterministic.
    """
    k = jax.random.split(key, 8)
    c1 = base_c * 2
    bound1 = 1.0 / (in_c ** 0.5)
    bound2 = 1.0 / (c1 ** 0.5)
    w1 = jax.random.uniform(k[0], (c1, in_c), jnp.float32, -bound1, bound1)
    w2 = jax.random.uniform(k[1], (base_c, c1), jnp.float32, -bound2, bound2)
    return dict(
        w1t=w1.T,                                                   # (in_c, 2*base_c)
        w2t=w2.T,                                                   # (2*base_c, base_c)
        bn1_gamma=1.0 + 0.1 * jax.random.normal(k[2], (c1,), jnp.float32),
        bn1_beta=0.1 * jax.random.normal(k[3], (c1,), jnp.float32),
        bn1_mean=0.05 * jax.random.normal(k[4], (c1,), jnp.float32),
        bn1_var=1.0 + 0.1 * jax.random.uniform(k[5], (c1,), jnp.float32),
        bn2_gamma=1.0 + 0.1 * jax.random.normal(k[6], (base_c,), jnp.float32),
        bn2_beta=0.1 * jax.random.normal(k[7], (base_c,), jnp.float32),
        bn2_mean=jnp.zeros((base_c,), jnp.float32),
        bn2_var=jnp.ones((base_c,), jnp.float32),
    )


if __name__ == "__main__":
    B, N, D = 2, 8, 16       # meta_batch, num_sample, point-feature dim
    in_c = 2 * D             # MLP consumes cat([aggr_feat, aggr_instance], -1)
    base_c = 16

    key = jax.random.PRNGKey(0)
    k_de, k_ie, k_pn, k_p = jax.random.split(key, 4)
    distribution_edge = jax.nn.softmax(
        jax.random.normal(k_de, (B, N, N), jnp.float32), axis=-1)
    instance_edge = jax.nn.softmax(
        jax.random.normal(k_ie, (B, N, N), jnp.float32), axis=-1)
    point_node = jax.random.normal(k_pn, (B, N, D), jnp.float32)

    params = init_params(k_p, in_c, base_c)

    # bf16 fast path (primary) + f32 validation path checked against pure JAX.
    out_bf16 = jax.block_until_ready(
        yuyi_point_update(distribution_edge, instance_edge, point_node, params))
    out_f32 = jax.block_until_ready(
        yuyi_point_update(distribution_edge, instance_edge, point_node, params,
                          compute_dtype=jnp.float32))
    ref = jax.block_until_ready(
        yuyi_point_update_ref(distribution_edge, instance_edge, point_node, params))

    assert out_bf16.shape == (B, N, base_c)
    denom = float(jnp.max(jnp.abs(ref))) + 1e-6
    err_f32 = float(jnp.max(jnp.abs(out_f32 - ref))) / denom
    err_bf16 = float(jnp.max(jnp.abs(out_bf16.astype(jnp.float32) - ref))) / denom
    assert err_f32 < 2e-2, f"f32 path mismatch: rel err {err_f32}"
    assert err_bf16 < 1e-1, f"bf16 path mismatch: rel err {err_bf16}"
    print("KERNEL_OK")
</pallas_src>

<mosaic_0001>
module attributes {stable_mosaic.version = 11 : i64} {
  func.func @_yuyi_point_update_kernel(%arg0: i32, %arg1: i32, %arg2: memref<2x8x8xbf16, #tpu.memory_space<vmem>>, %arg3: memref<2x8x8xbf16, #tpu.memory_space<vmem>>, %arg4: memref<2x8x16xbf16, #tpu.memory_space<vmem>>, %arg5: memref<16x32xbf16, #tpu.memory_space<vmem>>, %arg6: memref<16x32xbf16, #tpu.memory_space<vmem>>, %arg7: memref<32x16xbf16, #tpu.memory_space<vmem>>, %arg8: memref<1x32xf32, #tpu.memory_space<vmem>>, %arg9: memref<1x16xf32, #tpu.memory_space<vmem>>, %arg10: memref<2x8x16xf32, #tpu.memory_space<vmem>>) attributes {dimension_semantics = [#tpu.dimension_semantics<parallel>, #tpu.dimension_semantics<parallel>], iteration_bounds = array<i64: 1, 1>, scalar_prefetch = 0 : i64, scratch_operands = 0 : i64, tpu.core_type = #tpu.core_type<tc>, window_params = [{transform_indices = @transform_0, window_bounds = array<i64: 2, 8, 8>}, {transform_indices = @transform_1, window_bounds = array<i64: 2, 8, 8>}, {transform_indices = @transform_2, window_bounds = array<i64: 2, 8, 16>}, {pipeline_mode = #tpu.pipeline_mode<synchronous>, transform_indices = @transform_3, window_bounds = array<i64: 16, 32>}, {pipeline_mode = #tpu.pipeline_mode<synchronous>, transform_indices = @transform_4, window_bounds = array<i64: 16, 32>}, {pipeline_mode = #tpu.pipeline_mode<synchronous>, transform_indices = @transform_5, window_bounds = array<i64: 32, 16>}, {pipeline_mode = #tpu.pipeline_mode<synchronous>, transform_indices = @transform_6, window_bounds = array<i64: 1, 32>}, {pipeline_mode = #tpu.pipeline_mode<synchronous>, transform_indices = @transform_7, window_bounds = array<i64: 1, 16>}, {transform_indices = @transform_8, window_bounds = array<i64: 2, 8, 16>}]} {
    %c8_i32 = arith.constant 8 : i32
    %0 = arith.muli %arg1, %c8_i32 : i32
    %1 = tpu.iota {dimensions = array<i32: 0>} : vector<8x8xi32>
    %2 = vector.broadcast %0 : i32 to vector<8x8xi32>
    %3 = arith.addi %1, %2 : vector<8x8xi32>
    %4 = tpu.iota {dimensions = array<i32: 1>} : vector<8x8xi32>
    %5 = arith.cmpi ne, %3, %4 : vector<8x8xi32>
    %6 = vector.shape_cast %5 : vector<8x8xi1> to vector<1x8x8xi1>
    %c0 = arith.constant 0 : index
    %c0_0 = arith.constant 0 : index
    %c0_1 = arith.constant 0 : index
    %7 = vector.load %arg2[%c0, %c0_0, %c0_1] : memref<2x8x8xbf16, #tpu.memory_space<vmem>>, vector<2x8x8xbf16>
    %c0_2 = arith.constant 0 : index
    %c0_3 = arith.constant 0 : index
    %c0_4 = arith.constant 0 : index
    %8 = vector.load %arg3[%c0_2, %c0_3, %c0_4] : memref<2x8x8xbf16, #tpu.memory_space<vmem>>, vector<2x8x8xbf16>
    %cst = arith.constant 0.000000e+00 : bf16
    %9 = vector.shape_cast %6 : vector<1x8x8xi1> to vector<1x8x8xi1>
    %10 = vector.broadcast %9 : vector<1x8x8xi1> to vector<2x8x8xi1>
    %11 = vector.broadcast %cst : bf16 to vector<2x8x8xbf16>
    %12 = arith.select %10, %7, %11 : vector<2x8x8xi1>, vector<2x8x8xbf16>
    %cst_5 = arith.constant 0.000000e+00 : bf16
    %13 = vector.shape_cast %6 : vector<1x8x8xi1> to vector<1x8x8xi1>
    %14 = vector.broadcast %13 : vector<1x8x8xi1> to vector<2x8x8xi1>
    %15 = vector.broadcast %cst_5 : bf16 to vector<2x8x8xbf16>
    %16 = arith.select %14, %8, %15 : vector<2x8x8xi1>, vector<2x8x8xbf16>
    %17 = math.absf %12 : vector<2x8x8xbf16>
    %18 = arith.extf %17 : vector<2x8x8xbf16> to vector<2x8x8xf32>
    %cst_6 = arith.constant dense<0.000000e+00> : vector<2x8xf32>
    %19 = vector.multi_reduction <add>, %18, %cst_6 [2] : vector<2x8x8xf32> to vector<2x8xf32>
    %20 = vector.shape_cast %19 : vector<2x8xf32> to vector<2x8x1xf32>
    %cst_7 = arith.constant 9.99999996E-13 : f32
    %21 = vector.broadcast %cst_7 : f32 to vector<2x8x1xf32>
    %22 = arith.maximumf %20, %21 : vector<2x8x1xf32>
    %23 = math.absf %16 : vector<2x8x8xbf16>
    %24 = arith.extf %23 : vector<2x8x8xbf16> to vector<2x8x8xf32>
    %cst_8 = arith.constant dense<0.000000e+00> : vector<2x8xf32>
    %25 = vector.multi_reduction <add>, %24, %cst_8 [2] : vector<2x8x8xf32> to vector<2x8xf32>
    %26 = vector.shape_cast %25 : vector<2x8xf32> to vector<2x8x1xf32>
    %cst_9 = arith.constant 9.99999996E-13 : f32
    %27 = vector.broadcast %cst_9 : f32 to vector<2x8x1xf32>
    %28 = arith.maximumf %26, %27 : vector<2x8x1xf32>
    %29 = tpu.reciprocal %22 {approx = true} : vector<2x8x1xf32> -> vector<2x8x1xf32>
    %30 = tpu.reciprocal %28 {approx = true} : vector<2x8x1xf32> -> vector<2x8x1xf32>
    %c0_10 = arith.constant 0 : index
    %c0_11 = arith.constant 0 : index
    %c0_12 = arith.constant 0 : index
    %31 = vector.load %arg4[%c0_10, %c0_11, %c0_12] : memref<2x8x16xbf16, #tpu.memory_space<vmem>>, vector<2x8x16xbf16>
    %32 = tpu.concatenate %12, %16 in 1 : vector<2x8x8xbf16>, vector<2x8x8xbf16> -> vector<2x16x8xbf16>
    "tpu.trace_start"() <{level = 10 : i32, message = "brk,bkd->brd"}> : () -> ()
    %cst_13 = arith.constant dense<0.000000e+00> : vector<2x16x16xf32>
    %33 = tpu.matmul %32, %31, %cst_13 {dimension_numbers = #tpu.dot_dimension_numbers<[2], [1], [1], [2], [0, 0, 0, 1, 1, 2], [0], [0]>} : vector<2x16x8xbf16>, vector<2x8x16xbf16>, vector<2x16x16xf32> -> vector<2x16x16xf32>
    "tpu.trace_stop"() : () -> ()
    %34 = vector.extract_strided_slice %33 {offsets = [0, 0, 0], sizes = [2, 8, 16], strides = [1, 1, 1]} : vector<2x16x16xf32> to vector<2x8x16xf32>
    %35 = vector.broadcast %29 : vector<2x8x1xf32> to vector<2x8x16xf32>
    %36 = arith.mulf %34, %35 : vector<2x8x16xf32>
    %37 = vector.extract_strided_slice %33 {offsets = [0, 8, 0], sizes = [2, 8, 16], strides = [1, 1, 1]} : vector<2x16x16xf32> to vector<2x8x16xf32>
    %38 = vector.broadcast %30 : vector<2x8x1xf32> to vector<2x8x16xf32>
    %39 = arith.mulf %37, %38 : vector<2x8x16xf32>
    %40 = vector.shape_cast %36 : vector<2x8x16xf32> to vector<16x16xf32>
    %41 = arith.truncf %40 : vector<16x16xf32> to vector<16x16xbf16>
    %42 = vector.shape_cast %39 : vector<2x8x16xf32> to vector<16x16xf32>
    %43 = arith.truncf %42 : vector<16x16xf32> to vector<16x16xbf16>
    %c0_14 = arith.constant 0 : index
    %c0_15 = arith.constant 0 : index
    %44 = vector.load %arg5[%c0_14, %c0_15] : memref<16x32xbf16, #tpu.memory_space<vmem>>, vector<16x32xbf16>
    %cst_16 = arith.constant dense<0.000000e+00> : vector<16x32xf32>
    %45 = tpu.matmul %41, %44, %cst_16 {dimension_numbers = #tpu.dot_dimension_numbers<[1], [0], [0], [1], [0, 0, 1, 1], [], []>} : vector<16x16xbf16>, vector<16x32xbf16>, vector<16x32xf32> -> vector<16x32xf32>
    %c0_17 = arith.constant 0 : index
    %c0_18 = arith.constant 0 : index
    %46 = vector.load %arg6[%c0_17, %c0_18] : memref<16x32xbf16, #tpu.memory_space<vmem>>, vector<16x32xbf16>
    %cst_19 = arith.constant dense<0.000000e+00> : vector<16x32xf32>
    %47 = tpu.matmul %43, %46, %cst_19 {dimension_numbers = #tpu.dot_dimension_numbers<[1], [0], [0], [1], [0, 0, 1, 1], [], []>} : vector<16x16xbf16>, vector<16x32xbf16>, vector<16x32xf32> -> vector<16x32xf32>
    %48 = arith.addf %45, %47 : vector<16x32xf32>
    %c0_20 = arith.constant 0 : index
    %c0_21 = arith.constant 0 : index
    %49 = vector.load %arg8[%c0_20, %c0_21] : memref<1x32xf32, #tpu.memory_space<vmem>>, vector<1x32xf32>
    %50 = vector.broadcast %49 : vector<1x32xf32> to vector<16x32xf32>
    %51 = arith.addf %48, %50 : vector<16x32xf32>
    %cst_22 = arith.constant 0.00999999977 : f32
    %52 = vector.broadcast %cst_22 : f32 to vector<16x32xf32>
    %53 = arith.mulf %52, %51 : vector<16x32xf32>
    %54 = arith.maximumf %51, %53 : vector<16x32xf32>
    %55 = arith.truncf %54 : vector<16x32xf32> to vector<16x32xbf16>
    %c0_23 = arith.constant 0 : index
    %c0_24 = arith.constant 0 : index
    %56 = vector.load %arg7[%c0_23, %c0_24] : memref<32x16xbf16, #tpu.memory_space<vmem>>, vector<32x16xbf16>
    %cst_25 = arith.constant dense<0.000000e+00> : vector<16x16xf32>
    %57 = tpu.matmul %55, %56, %cst_25 {dimension_numbers = #tpu.dot_dimension_numbers<[1], [0], [0], [1], [0, 0, 1, 1], [], []>} : vector<16x32xbf16>, vector<32x16xbf16>, vector<16x16xf32> -> vector<16x16xf32>
    %c0_26 = arith.constant 0 : index
    %c0_27 = arith.constant 0 : index
    %58 = vector.load %arg9[%c0_26, %c0_27] : memref<1x16xf32, #tpu.memory_space<vmem>>, vector<1x16xf32>
    %59 = vector.broadcast %58 : vector<1x16xf32> to vector<16x16xf32>
    %60 = arith.addf %57, %59 : vector<16x16xf32>
    %cst_28 = arith.constant 0.00999999977 : f32
    %61 = vector.broadcast %cst_28 : f32 to vector<16x16xf32>
    %62 = arith.mulf %61, %60 : vector<16x16xf32>
    %63 = arith.maximumf %60, %62 : vector<16x16xf32>
    %64 = vector.shape_cast %63 : vector<16x16xf32> to vector<2x8x16xf32>
    %c0_29 = arith.constant 0 : index
    %c0_30 = arith.constant 0 : index
    %c0_31 = arith.constant 0 : index
    %65 = vector.load %arg10[%c0_29, %c0_30, %c0_31] : memref<2x8x16xf32, #tpu.memory_space<vmem>>, vector<2x8x16xf32>
    tpu.vector_store %arg10[%c0_29, %c0_30, %c0_31], %64 {strides = array<i32>} : memref<2x8x16xf32, #tpu.memory_space<vmem>>, vector<2x8x16xf32>,
    return
  }
  func.func @transform_0(%arg0: i32, %arg1: i32) -> (i32, i32, i32) {
    %c0_i32 = arith.constant 0 : i32
    %c0_i32_0 = arith.constant 0 : i32
    return %arg0, %arg1, %c0_i32 : i32, i32, i32
  }
  func.func @transform_1(%arg0: i32, %arg1: i32) -> (i32, i32, i32) {
    %c0_i32 = arith.constant 0 : i32
    %c0_i32_0 = arith.constant 0 : i32
    return %arg0, %arg1, %c0_i32 : i32, i32, i32
  }
  func.func @transform_2(%arg0: i32, %arg1: i32) -> (i32, i32, i32) {
    %c0_i32 = arith.constant 0 : i32
    %c0_i32_0 = arith.constant 0 : i32
    %c0_i32_1 = arith.constant 0 : i32
    return %arg0, %c0_i32, %c0_i32_0 : i32, i32, i32
  }
  func.func @transform_3(%arg0: i32, %arg1: i32) -> (i32, i32) {
    %c0_i32 = arith.constant 0 : i32
    %c0_i32_0 = arith.constant 0 : i32
    %c0_i32_1 = arith.constant 0 : i32
    return %c0_i32, %c0_i32_0 : i32, i32
  }
  func.func @transform_4(%arg0: i32, %arg1: i32) -> (i32, i32) {
    %c0_i32 = arith.constant 0 : i32
    %c0_i32_0 = arith.constant 0 : i32
    %c0_i32_1 = arith.constant 0 : i32
    return %c0_i32, %c0_i32_0 : i32, i32
  }
  func.func @transform_5(%arg0: i32, %arg1: i32) -> (i32, i32) {
    %c0_i32 = arith.constant 0 : i32
    %c0_i32_0 = arith.constant 0 : i32
    %c0_i32_1 = arith.constant 0 : i32
    return %c0_i32, %c0_i32_0 : i32, i32
  }
  func.func @transform_6(%arg0: i32, %arg1: i32) -> (i32, i32) {
    %c0_i32 = arith.constant 0 : i32
    %c0_i32_0 = arith.constant 0 : i32
    %c0_i32_1 = arith.constant 0 : i32
    return %c0_i32, %c0_i32_0 : i32, i32
  }
  func.func @transform_7(%arg0: i32, %arg1: i32) -> (i32, i32) {
    %c0_i32 = arith.constant 0 : i32
    %c0_i32_0 = arith.constant 0 : i32
    %c0_i32_1 = arith.constant 0 : i32
    return %c0_i32, %c0_i32_0 : i32, i32
  }
  func.func @transform_8(%arg0: i32, %arg1: i32) -> (i32, i32, i32) {
    %c0_i32 = arith.constant 0 : i32
    %c0_i32_0 = arith.constant 0 : i32
    return %arg0, %arg1, %c0_i32 : i32, i32, i32
  }
}

</mosaic_0001>

<bundles_post_ra>
// kernel: tpu_custom_call.1
= control target key start
LH: loop header
LB: loop body
LE: loop exit
PB: predicated region body
PF: predicated region fallthrough
CT: control target
= control target key end

     0   :  { %13 = vsyncpa [#allocation3], 0  ;;  %s533_s0 = inlined_call_operand.vmem [shape: bf16[2,8,8], index: 0, kind: input, shape index: {}]   ;;  %s534_s1 = inlined_call_operand.vmem [shape: bf16[2,8,8], index: 1, kind: input, shape index: {}]   ;;  %s535_s2 = inlined_call_operand.vmem [shape: bf16[2,8,16], index: 2, kind: input, shape index: {}]   ;;  %s536_s3 = inlined_call_operand.hbm [shape: bf16[16,32], index: 3, kind: input, shape index: {}]   ;;  %s537_s4 = inlined_call_operand.hbm [shape: bf16[16,32], index: 4, kind: input, shape index: {}]   ;;  %s538_s5 = inlined_call_operand.vmem [shape: bf16[32,16], index: 5, kind: input, shape index: {}]   ;;  %s539_s6 = inlined_call_operand.vmem [shape: f32[1,32], index: 6, kind: input, shape index: {}]   ;;  %s540_s7 = inlined_call_operand.vmem [shape: f32[1,16], index: 7, kind: input, shape index: {}]   ;;  %s541_s8 = inlined_call_operand.hbm [shape: f32[2,8,16], index: 8, kind: output, shape index: {}]  }
   0x1   :  { %14 = vsyncpa [#allocation6], 0 }
   0x2   :  { %15 = vsyncpa [#allocation4], 0  ;;  %s26_s29 = sshll.u32 %s536_s3, 4  ;;  %s416_s30 = smov [#allocation2]   ;;  %s27_s29 = int_to_ptr.hbm [resolvable:$true] %s26_s29 }
   0x3   :  { %s28_s9 = sshll.u32 %s416_s30, 4  ;;  %s39_s12 = sshll.u32 %s537_s4, 4  ;;  %s29_s9 = int_to_ptr.vmem [resolvable:$true] %s28_s9  ;;  %s40_s12 = int_to_ptr.hbm [resolvable:$true] %s39_s12 }
   0x4   :  { %s417_s13 = smov 64   ;;  %s418_s14 = smov 4  }
   0x5   :  { %34 = dma.hbm_to_vmem [thread:$0]  %s27_s29, 128, %s29_s9, [#allocation3], %s417_s13, %s417_s13, %s418_s14  }
   0x6   :  { %s419_s15 = smov [#allocation5]  }
   0x7   :  { %s41_s16 = sshll.u32 %s419_s15, 4  ;;  %s42_s16 = int_to_ptr.vmem [resolvable:$true] %s41_s16 }
   0x8   :  { %47 = dma.hbm_to_vmem [thread:$0]  %s40_s12, 128, %s42_s16, [#allocation6], %s417_s13, %s417_s13, %s418_s14  }
   0x9   :  { %410 = dma.done.wait [#allocation3], 128  }
   0xa   :  { %411 = vsyncadd [#allocation3], 4294967168 }
   0xb   :  { %412 = dma.done.wait [#allocation6], 128  }
   0xc   :  { %413 = vsyncadd [#allocation6], 4294967168  ;;  %v64_v0 = vlaneseq  ;;  %vm119_vm1 = vcmask 1043456   ;;  %v111_v4 = vld [vmem:[%s535_s2] sm:$0xf]  ;;  %vm86_vm3 = vcmask 64512  }
   0xd   :  { %v112_v5 = vld [vmem:[%s535_s2 + $0x4] sm:$0xf]  ;;  %v71_v6 = vld [vmem:[%s533_s0] sm:$0xf]  ;;  %v129_v7 = vsel %vm119_vm1, %v111_v4, 0  ;;  %v318_v35 = vld [vmem:[#allocation5] sm:$0xff] }
   0xe   :  { %v65_v1 = vshrl.u32 %v64_v0, 7  ;;  %v69_v2 = vand.u32 127, %v64_v0  ;;  %v148_v8 = vsel %vm119_vm1, %v112_v5, 0  ;;  %v73_v9 = vld [vmem:[%s534_s1] sm:$0xf]  ;;  %138 = vmatpush.bf16.msra.mxu0 %v129_v7  ;;  %191 = vmatpush.bf16.msra.mxu2 %v318_v35  ;;  %vm180_vm4 = vcmask 130048  }
   0xf   :  { %157 = vmatpush.bf16.msra.mxu1 %v148_v8  ;;  %v72_v12 = vld [vmem:[%s533_s0 + $0x4] sm:$0xf]  ;;  %v320_v58 = vld [vmem:[%s538_s5 + $0x8] sm:$0xff]  ;;  %v328_v63 = vld [vmem:[%s539_s6] ss:$0 sm:$0xff]  ;;  %vm252_vm5 = vcmask 261120  }
  0x10   :  { %vm70_vm0 = vcmp.ne.s32.totalorder %v65_v1, %v69_v2  ;;  %v74_v13 = vld [vmem:[%s534_s1 + $0x4] sm:$0xf]  ;;  %s420_s6 = smov [#allocation7]   ;;  %s282_s12 = sshll.u32 %s541_s8, 4  ;;  %s283_s12 = int_to_ptr.hbm [resolvable:$true] %s282_s12 }
  0x11   :  { %vm474_vm2 = vmpackc.low %vm70_vm0, %vm70_vm0  ;;  %v317_v34 = vld [vmem:[#allocation2] sm:$0xff]  ;;  %s280_s9 = sshll.u32 %s420_s6, 4  ;;  %s422_s13 = smov 8   ;;  %s281_s9 = int_to_ptr.vmem [resolvable:$true] %s280_s9 }
  0x12   :  { %v78_v10 = vsel %vm474_vm2, %v71_v6, 0  ;;  %v80_v11 = vsel %vm474_vm2, %v73_v9, 0  ;;  %v81_v15 = vsel %vm474_vm2, %v74_v13, 0  ;;  %v79_v17 = vsel %vm474_vm2, %v72_v12, 0  ;;  %214 = vmatpush.bf16.msra.mxu3 %v317_v34  ;;  %262 = vmatpush.bf16.msrb.mxu0 %v320_v58  ;;  %v319_v59 = vld [vmem:[%s538_s5] sm:$0xff] }
  0x13   :  { %v115_v14 = vunpack.c.l.b16 %v80_v11  ;;  %v82_v16 = vand.u32 2147450879, %v78_v10  ;;  %v116_v18 = vunpack.c.l.b16 %v81_v15  ;;  %v95_v19 = vand.u32 2147450879, %v80_v11 }
  0x14   :  { %v83_v22 = vand.u32 2147450879, %v79_v17  ;;  %v96_v25 = vand.u32 2147450879, %v81_v15 }
  0x15   :  { %v117_v20 = vpack.c.b16 %v115_v14, %v115_v14  ;;  %v84_v21 = vunpack.c.l.bf16 %v82_v16  ;;  %v118_v23 = vpack.c.b16 %v116_v18, %v116_v18  ;;  %v97_v24 = vunpack.c.l.bf16 %v95_v19 }
  0x16   :  { %v85_v30 = vunpack.c.l.bf16 %v83_v22  ;;  %v98_v31 = vunpack.c.l.bf16 %v96_v25  ;;  %263 = vmatpush.bf16.msrb.mxu0 %v319_v59 }
  0x17   :  { %v122_v26 = vsel %vm119_vm1, %v78_v10, %v117_v20  ;;  %v87_v27 = vsel %vm86_vm3, %v84_v21, 0.0  ;;  %v125_v28 = vsel %vm119_vm1, %v79_v17, %v118_v23  ;;  %v99_v29 = vsel %vm86_vm3, %v97_v24, 0.0  ;;  %v329_v10 = vld [vmem:[%s540_s7] ss:$0 sm:$0xff]  ;;  %s421_s7 = smov 128  }
  0x18   :  { %296 = vmatmul.msk.bf16.vlgmr.msra.gmra.mxu0 %vm86_vm3, %v122_v26  ;;  %88 = vadd.xlane.f32.xlu0 %v87_v27  ;;  %v90_v32 = vsel %vm86_vm3, %v85_v30, 0.0  ;;  %v102_v33 = vsel %vm86_vm3, %v98_v31, 0.0 }
  0x19   :  { %297 = vmatmul.msk.bf16.vlgmr.msra.gmra.mxu1 %vm86_vm3, %v125_v28  ;;  %100 = vadd.xlane.f32.xlu1 %v99_v29 }
  0x20   :  { %91 = vadd.xlane.f32.xlu0 %v90_v32 }
  0x21   :  { %103 = vadd.xlane.f32.xlu1 %v102_v33 }
  0x8b   :  { %v89_v36 = vpop.xlane.xlu0 %88 }
  0x8c   :  { %v101_v37 = vpop.xlane.xlu1 %100  ;;  %v93_v38 = vmax.f32 %v89_v36, 1e-12 }
  0x8d   :  { %v105_v39 = vmax.f32 %v101_v37, 1e-12 }
  0x8e   :  { %330 = vrcp.f32 %v93_v38 }
  0x8f   :  { %332 = vrcp.f32 %v105_v39 }
  0x93   :  { %v92_v40 = vpop.xlane.xlu0 %91 }
  0x94   :  { %v94_v41 = vmax.f32 %v92_v40, 1e-12  ;;  %v104_v42 = vpop.xlane.xlu1 %103  ;;  %v331_v46 = vpop.eup %330 }
  0x95   :  { %v106_v43 = vmax.f32 %v104_v42, 1e-12  ;;  %v140_v44 = vpop.f32.mrf.mxu0  ;;  %v333_v47 = vpop.eup %332 }
  0x96   :  { %334 = vrcp.f32 %v94_v41  ;;  %v159_v45 = vpop.f32.mrf.mxu1  ;;  %v164_v50 = vmul.f32 %v331_v46, %v140_v44 }
  0x97   :  { %336 = vrcp.f32 %v106_v43 }
  0x9c   :  { %v335_v48 = vpop.eup %334 }
  0x9d   :  { %v337_v49 = vpop.eup %336  ;;  %v165_v51 = vmul.f32 %v335_v48, %v159_v45  ;;  %v142_v52 = vpop.f32.mrf.mxu0 }
  0x9e   :  { %v166_v53 = vmul.f32 %v333_v47, %v142_v52  ;;  %v161_v54 = vpop.f32.mrf.mxu1 }
  0x9f   :  { %v168_v55 = vpack.c.bf16 %v165_v51, %v164_v50  ;;  %v167_v56 = vmul.f32 %v337_v49, %v161_v54 }
  0xa1   :  { %v169_v57 = vpack.c.bf16 %v167_v56, %v166_v53  ;;  %307 = vmatmul.msk.bf16.vlgmr.msra.gmra.mxu3 %vm180_vm4, %v168_v55 }
  0xa3   :  { %302 = vmatmul.msk.bf16.vlgmr.msra.gmra.mxu2 %vm180_vm4, %v169_v57 }
 0x124   :  { %v216_v60 = vpop.f32.mrf.mxu3 }
 0x126   :  { %v193_v61 = vpop.f32.mrf.mxu2 }
 0x127   :  { %v217_v62 = vadd.f32 %v216_v60, %v193_v61 }
 0x129   :  { %v225_v1 = vadd.f32 %v328_v63, %v217_v62 }
 0x12b   :  { %v227_v4 = vmul.f32 0.01, %v225_v1 }
 0x12c   :  { %v218_v0 = vpop.f32.mrf.mxu3 }
 0x12d   :  { %v229_v7 = vmax.f32 %v225_v1, %v227_v4 }
 0x12e   :  { %v195_v2 = vpop.f32.mrf.mxu2 }
 0x12f   :  { %v219_v3 = vadd.f32 %v218_v0, %v195_v2 }
 0x131   :  { %v226_v5 = vadd.f32 %v328_v63, %v219_v3 }
 0x133   :  { %v228_v6 = vmul.f32 0.01, %v226_v5 }
 0x135   :  { %v230_v8 = vmax.f32 %v226_v5, %v228_v6 }
 0x137   :  { %v231_v9 = vpack.c.bf16 %v230_v8, %v229_v7 }
 0x139   :  { %316 = vmatmul.msk.bf16.vlgmr.msrb.gmra.mxu0 %vm252_vm5, %v231_v9 }
 0x1b6   :  { %v265_v11 = vpop.f32.mrf.mxu0 }
 0x1b7   :  { %v266_v12 = vadd.f32 %v329_v10, %v265_v11 }
 0x1b9   :  { %v270_v13 = vmul.f32 0.01, %v266_v12 }
 0x1bb   :  { %v272_v14 = vmax.f32 %v266_v12, %v270_v13 }
 0x1bd   :  { %274 = vst.msk [vmem:[#allocation7] sm:$0xff] %vm180_vm4, %v272_v14 }
 0x1be   :  { %v267_v15 = vpop.f32.mrf.mxu0 }
 0x1bf   :  { %v268_v16 = vadd.f32 %v329_v10, %v267_v15 }
 0x1c1   :  { %v271_v17 = vmul.f32 0.01, %v268_v16 }
 0x1c3   :  { %v273_v18 = vmax.f32 %v268_v16, %v271_v17 }
 0x1c5   :  { %275 = vst.msk [vmem:[#allocation7 + $0x8] sm:$0xff] %vm180_vm4, %v273_v18 }
 0x1c6   :  { %288 = dma.vmem_to_hbm [thread:$0]  %s281_s9, 256, %s283_s12, [#allocation4], %s421_s7, %s421_s7, %s422_s13  }
 0x1c7   :  { %414 = dma.done.wait [#allocation4], 256  }
 0x1c8   :  { %415 = vsyncadd [#allocation4], 4294967040 }
 0x1c9   :  { %293 = vsyncpa [#allocation3], 1 }
 0x1ca   :  { %294 = vsyncpa [#allocation6], 1 }
 0x1cb   :  { %295 = vsyncpa [#allocation4], 1 }

</bundles_post_ra>
